<compile_context>
chip_gen: v7x
topology: tpu7x:2x2x1
jax: 0.10.0
libtpu: 0.0.40
codegen_flags: <defaults>
</compile_context>

<pallas_src>
import functools
import math

import jax
import jax.numpy as jnp
import numpy as np
from jax import lax
from jax.experimental import pallas as pl
from jax.experimental.pallas import tpu as pltpu


def _kloss_kernel(sr_ref, hr_ref, a_ref, btr_ref, bti_ref, mask_ref, out_ref,
                  *, split_a, unroll):
    tb = sr_ref.shape[0]
    h, w = mask_ref.shape
    cdt = btr_ref.dtype                       # MXU input dtype (bf16)

    # Constant operands -- hoisted out of the per-image loop.
    btr = btr_ref[...]                        # (w, w)   Re(B^T)
    bti = bti_ref[...]                        # (w, w)   Im(B^T)
    if split_a:
        ar = a_ref[0]                         # (h, h)   Re(A)
        ai = a_ref[1]                         # (h, h)   Im(A)
    else:
        a2 = a_ref[...]                       # (2h, 2h) [[Ar, -Ai], [Ai, Ar]]

    def one_image(b, acc):
        # Difference in f32 (cancellation-safe), bf16 only into the MXU.
        d = sr_ref[b] - hr_ref[b]             # (2, h, w) f32
        if split_a:
            xr = d[0].astype(cdt)
            xi = d[1].astype(cdt)
            # Row DFT: Y = A X  (4 (h,h)@(h,w) matmuls; same FLOPs as packed).
            yr = (jnp.dot(ar, xr, preferred_element_type=jnp.float32)
                  - jnp.dot(ai, xi, preferred_element_type=jnp.float32)).astype(cdt)
            yi = (jnp.dot(ai, xr, preferred_element_type=jnp.float32)
                  + jnp.dot(ar, xi, preferred_element_type=jnp.float32)).astype(cdt)
            # Column DFT: Z = Y B^T.
            zr = (jnp.dot(yr, btr, preferred_element_type=jnp.float32)
                  - jnp.dot(yi, bti, preferred_element_type=jnp.float32))
            zi = (jnp.dot(yr, bti, preferred_element_type=jnp.float32)
                  + jnp.dot(yi, btr, preferred_element_type=jnp.float32))
        else:
            # [Xr; Xi] stacked on sublanes -- contiguous reshape, no concat.
            xs = d.reshape(2 * h, w).astype(cdt)
            # Row DFT: [Yr; Yi] = A2 @ [Xr; Xi]  (one MXU matmul).
            ys = jnp.dot(a2, xs, preferred_element_type=jnp.float32).astype(cdt)
            # Column DFT against Btr / Bti separately -> sublane-only slicing.
            u = jnp.dot(ys, btr, preferred_element_type=jnp.float32)   # (2h, w)
            v = jnp.dot(ys, bti, preferred_element_type=jnp.float32)   # (2h, w)
            zr = u[:h] - v[h:]
            zi = v[:h] + u[h:]
        return acc + jnp.sqrt(zr * zr + zi * zi)

    acc = lax.fori_loop(0, tb, one_image, jnp.zeros((h, w), jnp.float32),
                        unroll=unroll)

    # Mask once per step, full reduce in-kernel; store the per-step partial as
    # a lane-dense broadcast scalar (unmasked vst, tiny HBM writeback).
    total = jnp.sum(mask_ref[...] * acc)
    out_ref[...] = jnp.full(out_ref.shape, total, dtype=jnp.float32)


def kloss(sr, hr, shape1, shape2, tb=None, split_a=None,
          mxu_dtype=jnp.bfloat16):
    """Pallas implementation of KLoss.forward(sr, None, hr, shape1, shape2)."""
    b, c, h, w = hr.shape
    assert c >= 2 and sr.shape == hr.shape

    sr = sr[:, :2].astype(jnp.float32)
    hr = hr[:, :2].astype(jnp.float32)

    if split_a is None:
        split_a = (2 * h) >= 512          # VMEM-driven gate (v7x: 64 MiB/TC)

    # Row-DFT matrix with fftshift folded into the row order:
    #   A[k, m] = exp(-2j*pi*(k - h//2)*m/h)
    kh = (np.arange(h) - h // 2)[:, None].astype(np.float64)
    mh = np.arange(h)[None, :].astype(np.float64)
    A = np.exp(-2j * np.pi * kh * mh / h)
    if split_a:
        a_np = np.stack([A.real, A.imag]).astype(np.float32)            # (2,h,h)
    else:
        a_np = np.block([[A.real, -A.imag],
                         [A.imag, A.real]]).astype(np.float32)          # (2h,2h)

    # Column-DFT matrix, pre-transposed on the host, split into Re/Im parts:
    #   B^T[p, n] = exp(-2j*pi*p*(n - w//2)/w)
    pw = np.arange(w)[:, None].astype(np.float64)
    nw = (np.arange(w) - w // 2)[None, :].astype(np.float64)
    Bt = np.exp(-2j * np.pi * pw * nw / w)
    btr_np = Bt.real.astype(np.float32)                                  # (w, w)
    bti_np = Bt.imag.astype(np.float32)                                  # (w, w)

    # Centered low-frequency rectangle is zeroed in the (real 0/1) mask.
    mask_np = np.ones((h, w), np.float32)
    mask_np[h // 2 - math.floor(shape1 / 2):h // 2 + math.ceil(shape1 / 2),
            w // 2 - math.floor(shape2 / 2):w // 2 + math.ceil(shape2 / 2)] = 0.0

    a_mat = jnp.asarray(a_np, dtype=mxu_dtype)
    btr = jnp.asarray(btr_np, dtype=mxu_dtype)
    bti = jnp.asarray(bti_np, dtype=mxu_dtype)
    mask = jnp.asarray(mask_np)

    # ---- per-generation VMEM budget (v7x: 64 MiB; v5e/v6e: 128 MiB) ----
    try:
        vmem_cap = int(pltpu.get_tpu_info().vmem_capacity_bytes)
    except Exception:
        vmem_cap = 64 * 1024 * 1024       # conservative fallback
    budget = (vmem_cap * 3) // 4

    csize = jnp.dtype(mxu_dtype).itemsize
    const_bytes = a_np.size * csize + 2 * w * w * csize + h * w * 4   # 1-buffered
    work_bytes = 12 * 2 * h * max(w, 128) * 4 + (1 << 20)             # temporaries
    per_img_bytes = 2 * 2 * 2 * h * w * 4      # sr+hr blocks, double-buffered, f32

    if tb is None:
        avail = max(per_img_bytes, budget - const_bytes - work_bytes)
        tb_max = int(max(1, min(b, 64, avail // per_img_bytes)))
        nsteps = int(pl.cdiv(b, tb_max))
        if b > 1:
            # >= 2 and even grid steps so both v7x TensorCores get work.
            nsteps = max(2, nsteps)
            nsteps += nsteps % 2
        tb = int(pl.cdiv(b, nsteps))
    else:
        tb = int(max(1, min(tb, b)))
        nsteps = int(pl.cdiv(b, tb))

    b_pad = nsteps * tb
    if b_pad != b:
        # Zero-padded images have sr - hr = 0 -> contribute exactly 0.
        pad = ((0, b_pad - b), (0, 0), (0, 0), (0, 0))
        sr = jnp.pad(sr, pad)
        hr = jnp.pad(hr, pad)

    est = tb * per_img_bytes + const_bytes + work_bytes
    vmem_limit = int(min(budget, max(32 * 1024 * 1024, 2 * est)))

    unroll = bool(h * w <= 128 * 128)     # unroll per-image loop only when small
    kernel = functools.partial(_kloss_kernel, split_a=split_a, unroll=unroll)
    a_ndim = a_np.ndim

    def build_call(single_buffer_consts):
        ck = ({"pipeline_mode": pl.Buffered(1)} if single_buffer_consts else {})
        return pl.pallas_call(
            kernel,
            out_shape=jax.ShapeDtypeStruct((nsteps, 1, 128), jnp.float32),
            grid_spec=pltpu.PrefetchScalarGridSpec(
                num_scalar_prefetch=0,
                grid=(nsteps,),
                in_specs=[
                    pl.BlockSpec((tb, 2, h, w), lambda i: (i, 0, 0, 0)),     # sr
                    pl.BlockSpec((tb, 2, h, w), lambda i: (i, 0, 0, 0)),     # hr
                    pl.BlockSpec(a_np.shape, lambda i: (0,) * a_ndim, **ck),  # A
                    pl.BlockSpec((w, w), lambda i: (0, 0), **ck),            # Re(B^T)
                    pl.BlockSpec((w, w), lambda i: (0, 0), **ck),            # Im(B^T)
                    pl.BlockSpec((h, w), lambda i: (0, 0), **ck),            # mask
                ],
                out_specs=pl.BlockSpec((1, 1, 128), lambda i: (i, 0, 0)),
            ),
            compiler_params=pltpu.CompilerParams(
                dimension_semantics=("parallel",),
                vmem_limit_bytes=vmem_limit),
        )

    try:
        partial_sums = build_call(True)(sr, hr, a_mat, btr, bti, mask)
    except Exception:
        # Fallback: default double-buffered constants (correct, more VMEM).
        partial_sums = build_call(False)(sr, hr, a_mat, btr, bti, mask)

    # Global 1/sqrt(h*w) DFT scale + mean over b * 1 * h * w elements
    # (original b), folded into a single scalar multiply.
    norm = 1.0 / (math.sqrt(h * w) * b * h * w)
    return jnp.sum(partial_sums[:, 0, 0]) * jnp.float32(norm)


def kloss_ref(sr, hr, shape1, shape2):
    """Pure-JAX reference mirroring the PyTorch forward (FSsr=None path)."""
    b, c, h, w = hr.shape
    hr_comp = hr[:, 0:1] + 1j * hr[:, 1:2]
    sr_comp = sr[:, 0:1] + 1j * sr[:, 1:2]
    scale = 1.0 / math.sqrt(h * w)
    FSsr = jnp.fft.fftshift(scale * jnp.fft.fftn(sr_comp, axes=(2, 3)),
                            axes=(2, 3))
    FShr = jnp.fft.fftshift(scale * jnp.fft.fftn(hr_comp, axes=(2, 3)),
                            axes=(2, 3))
    mask = jnp.ones_like(FSsr)
    mask = mask.at[:, :,
                   h // 2 - math.floor(shape1 / 2):h // 2 + math.ceil(shape1 / 2),
                   w // 2 - math.floor(shape2 / 2):w // 2 + math.ceil(shape2 / 2)
                   ].set(0)
    return jnp.mean(jnp.abs((FSsr - FShr) * mask))


if __name__ == "__main__":
    key = jax.random.PRNGKey(0)
    k1, k2, k3, k4 = jax.random.split(key, 4)

    # bf16 MXU inputs (f32 accumulation / elementwise): loosen tolerances a bit
    # relative to the all-f32 path; genuine math bugs are O(1) and still caught.
    RTOL, ATOL = 3e-3, 1e-3

    # Case 1: b=2, c=2, 16x16.  Auto tiling -> tb=1, even 2-step grid.
    b, c, h, w = 2, 2, 16, 16
    shape1, shape2 = 6, 6
    sr = jax.random.normal(k1, (b, c, h, w), dtype=jnp.float32)
    hr = jax.random.normal(k2, (b, c, h, w), dtype=jnp.float32)
    loss = kloss(sr, hr, shape1, shape2)
    jax.block_until_ready(loss)
    ref = kloss_ref(sr, hr, shape1, shape2)
    np.testing.assert_allclose(np.asarray(loss), np.asarray(ref),
                               rtol=RTOL, atol=ATOL)

    # Case 2: b=3, c=4, explicit tb=2 (exercises batch zero-padding, extra
    # input channels being ignored, and the split Ar/Ai row-DFT path).
    b2, c2 = 3, 4
    sr2 = jax.random.normal(k3, (b2, c2, h, w), dtype=jnp.float32)
    hr2 = jax.random.normal(k4, (b2, c2, h, w), dtype=jnp.float32)
    loss2 = kloss(sr2, hr2, shape1, shape2, tb=2, split_a=True)
    jax.block_until_ready(loss2)
    ref2 = kloss_ref(sr2, hr2, shape1, shape2)
    np.testing.assert_allclose(np.asarray(loss2), np.asarray(ref2),
                               rtol=RTOL, atol=ATOL)

    print("KERNEL_OK")
</pallas_src>

<mosaic_0001>
module attributes {stable_mosaic.version = 11 : i64} {
  func.func @_kloss_kernel(%arg0: i32, %arg1: memref<1x2x16x16xf32, #tpu.memory_space<vmem>>, %arg2: memref<1x2x16x16xf32, #tpu.memory_space<vmem>>, %arg3: memref<32x32xbf16, #tpu.memory_space<vmem>>, %arg4: memref<16x16xbf16, #tpu.memory_space<vmem>>, %arg5: memref<16x16xbf16, #tpu.memory_space<vmem>>, %arg6: memref<16x16xf32, #tpu.memory_space<vmem>>, %arg7: memref<1x1x128xf32, #tpu.memory_space<vmem>>) attributes {dimension_semantics = [#tpu.dimension_semantics<parallel>], iteration_bounds = array<i64: 2>, scalar_prefetch = 0 : i64, scratch_operands = 0 : i64, tpu.core_type = #tpu.core_type<tc>, window_params = [{transform_indices = @transform_0, window_bounds = array<i64: 1, 2, 16, 16>}, {transform_indices = @transform_1, window_bounds = array<i64: 1, 2, 16, 16>}, {pipeline_mode = #tpu.pipeline_mode<synchronous>, transform_indices = @transform_2, window_bounds = array<i64: 32, 32>}, {pipeline_mode = #tpu.pipeline_mode<synchronous>, transform_indices = @transform_3, window_bounds = array<i64: 16, 16>}, {pipeline_mode = #tpu.pipeline_mode<synchronous>, transform_indices = @transform_4, window_bounds = array<i64: 16, 16>}, {pipeline_mode = #tpu.pipeline_mode<synchronous>, transform_indices = @transform_5, window_bounds = array<i64: 16, 16>}, {transform_indices = @transform_6, window_bounds = array<i64: 1, 1, 128>}]} {
    %c0 = arith.constant 0 : index
    %c0_0 = arith.constant 0 : index
    %0 = vector.load %arg4[%c0, %c0_0] : memref<16x16xbf16, #tpu.memory_space<vmem>>, vector<16x16xbf16>
    %c0_1 = arith.constant 0 : index
    %c0_2 = arith.constant 0 : index
    %1 = vector.load %arg5[%c0_1, %c0_2] : memref<16x16xbf16, #tpu.memory_space<vmem>>, vector<16x16xbf16>
    %c0_3 = arith.constant 0 : index
    %c0_4 = arith.constant 0 : index
    %2 = vector.load %arg3[%c0_3, %c0_4] : memref<32x32xbf16, #tpu.memory_space<vmem>>, vector<32x32xbf16>
    %cst = arith.constant 0.000000e+00 : f32
    %3 = vector.broadcast %cst : f32 to vector<16x16xf32>
    %c0_i32 = arith.constant 0 : i32
    %4 = arith.index_cast %c0_i32 : i32 to index
    %c0_5 = arith.constant 0 : index
    %c0_6 = arith.constant 0 : index
    %c0_7 = arith.constant 0 : index
    %5 = vector.load %arg1[%4, %c0_5, %c0_6, %c0_7] : memref<1x2x16x16xf32, #tpu.memory_space<vmem>>, vector<1x2x16x16xf32>
    %6 = vector.shape_cast %5 : vector<1x2x16x16xf32> to vector<2x16x16xf32>
    %7 = arith.index_cast %c0_i32 : i32 to index
    %c0_8 = arith.constant 0 : index
    %c0_9 = arith.constant 0 : index
    %c0_10 = arith.constant 0 : index
    %8 = vector.load %arg2[%7, %c0_8, %c0_9, %c0_10] : memref<1x2x16x16xf32, #tpu.memory_space<vmem>>, vector<1x2x16x16xf32>
    %9 = vector.shape_cast %8 : vector<1x2x16x16xf32> to vector<2x16x16xf32>
    %10 = arith.subf %6, %9 : vector<2x16x16xf32>
    %11 = vector.shape_cast %10 : vector<2x16x16xf32> to vector<32x16xf32>
    %12 = arith.truncf %11 : vector<32x16xf32> to vector<32x16xbf16>
    %cst_11 = arith.constant dense<0.000000e+00> : vector<32x16xf32>
    %13 = tpu.matmul %2, %12, %cst_11 {dimension_numbers = #tpu.dot_dimension_numbers<[1], [0], [0], [1], [0, 0, 1, 1], [], []>} : vector<32x32xbf16>, vector<32x16xbf16>, vector<32x16xf32> -> vector<32x16xf32>
    %14 = arith.truncf %13 : vector<32x16xf32> to vector<32x16xbf16>
    %cst_12 = arith.constant dense<0.000000e+00> : vector<32x16xf32>
    %15 = tpu.matmul %14, %0, %cst_12 {dimension_numbers = #tpu.dot_dimension_numbers<[1], [0], [0], [1], [0, 0, 1, 1], [], []>} : vector<32x16xbf16>, vector<16x16xbf16>, vector<32x16xf32> -> vector<32x16xf32>
    %cst_13 = arith.constant dense<0.000000e+00> : vector<32x16xf32>
    %16 = tpu.matmul %14, %1, %cst_13 {dimension_numbers = #tpu.dot_dimension_numbers<[1], [0], [0], [1], [0, 0, 1, 1], [], []>} : vector<32x16xbf16>, vector<16x16xbf16>, vector<32x16xf32> -> vector<32x16xf32>
    %17 = vector.extract_strided_slice %15 {offsets = [0, 0], sizes = [16, 16], strides = [1, 1]} : vector<32x16xf32> to vector<16x16xf32>
    %18 = vector.extract_strided_slice %16 {offsets = [16, 0], sizes = [16, 16], strides = [1, 1]} : vector<32x16xf32> to vector<16x16xf32>
    %19 = arith.subf %17, %18 : vector<16x16xf32>
    %20 = vector.extract_strided_slice %16 {offsets = [0, 0], sizes = [16, 16], strides = [1, 1]} : vector<32x16xf32> to vector<16x16xf32>
    %21 = vector.extract_strided_slice %15 {offsets = [16, 0], sizes = [16, 16], strides = [1, 1]} : vector<32x16xf32> to vector<16x16xf32>
    %22 = arith.addf %20, %21 : vector<16x16xf32>
    %23 = arith.mulf %19, %19 : vector<16x16xf32>
    %24 = arith.mulf %22, %22 : vector<16x16xf32>
    %25 = arith.addf %23, %24 : vector<16x16xf32>
    %26 = math.sqrt %25 : vector<16x16xf32>
    %27 = arith.addf %3, %26 : vector<16x16xf32>
    %c1_i32 = arith.constant 1 : i32
    %c0_14 = arith.constant 0 : index
    %c0_15 = arith.constant 0 : index
    %28 = vector.load %arg6[%c0_14, %c0_15] : memref<16x16xf32, #tpu.memory_space<vmem>>, vector<16x16xf32>
    %29 = arith.mulf %28, %27 : vector<16x16xf32>
    %30 = vector.shape_cast %29 : vector<16x16xf32> to vector<1x16x16xf32>
    %cst_16 = arith.constant dense<0.000000e+00> : vector<1xf32>
    %31 = vector.multi_reduction <add>, %30, %cst_16 [1, 2] : vector<1x16x16xf32> to vector<1xf32>
    %32 = vector.shape_cast %31 : vector<1xf32> to vector<1x1x1xf32>
    %33 = vector.extract %32[0, 0, 0] : f32 from vector<1x1x1xf32>
    %34 = vector.broadcast %33 : f32 to vector<1x1x128xf32>
    %c0_17 = arith.constant 0 : index
    %c0_18 = arith.constant 0 : index
    %c0_19 = arith.constant 0 : index
    %35 = vector.load %arg7[%c0_17, %c0_18, %c0_19] : memref<1x1x128xf32, #tpu.memory_space<vmem>>, vector<1x1x128xf32>
    tpu.vector_store %arg7[%c0_17, %c0_18, %c0_19], %34 {strides = array<i32>} : memref<1x1x128xf32, #tpu.memory_space<vmem>>, vector<1x1x128xf32>,
    return
  }
  func.func @transform_0(%arg0: i32) -> (i32, i32, i32, i32) {
    %c0_i32 = arith.constant 0 : i32
    %c0_i32_0 = arith.constant 0 : i32
    %c0_i32_1 = arith.constant 0 : i32
    %c0_i32_2 = arith.constant 0 : i32
    return %arg0, %c0_i32, %c0_i32_0, %c0_i32_1 : i32, i32, i32, i32
  }
  func.func @transform_1(%arg0: i32) -> (i32, i32, i32, i32) {
    %c0_i32 = arith.constant 0 : i32
    %c0_i32_0 = arith.constant 0 : i32
    %c0_i32_1 = arith.constant 0 : i32
    %c0_i32_2 = arith.constant 0 : i32
    return %arg0, %c0_i32, %c0_i32_0, %c0_i32_1 : i32, i32, i32, i32
  }
  func.func @transform_2(%arg0: i32) -> (i32, i32) {
    %c0_i32 = arith.constant 0 : i32
    %c0_i32_0 = arith.constant 0 : i32
    %c0_i32_1 = arith.constant 0 : i32
    return %c0_i32, %c0_i32_0 : i32, i32
  }
  func.func @transform_3(%arg0: i32) -> (i32, i32) {
    %c0_i32 = arith.constant 0 : i32
    %c0_i32_0 = arith.constant 0 : i32
    %c0_i32_1 = arith.constant 0 : i32
    return %c0_i32, %c0_i32_0 : i32, i32
  }
  func.func @transform_4(%arg0: i32) -> (i32, i32) {
    %c0_i32 = arith.constant 0 : i32
    %c0_i32_0 = arith.constant 0 : i32
    %c0_i32_1 = arith.constant 0 : i32
    return %c0_i32, %c0_i32_0 : i32, i32
  }
  func.func @transform_5(%arg0: i32) -> (i32, i32) {
    %c0_i32 = arith.constant 0 : i32
    %c0_i32_0 = arith.constant 0 : i32
    %c0_i32_1 = arith.constant 0 : i32
    return %c0_i32, %c0_i32_0 : i32, i32
  }
  func.func @transform_6(%arg0: i32) -> (i32, i32, i32) {
    %c0_i32 = arith.constant 0 : i32
    %c0_i32_0 = arith.constant 0 : i32
    %c0_i32_1 = arith.constant 0 : i32
    return %arg0, %c0_i32, %c0_i32_0 : i32, i32, i32
  }
}

module attributes {stable_mosaic.version = 11 : i64} {
  func.func @_kloss_kernel(%arg0: i32, %arg1: memref<1x2x16x16xf32, #tpu.memory_space<vmem>>, %arg2: memref<1x2x16x16xf32, #tpu.memory_space<vmem>>, %arg3: memref<32x32xbf16, #tpu.memory_space<vmem>>, %arg4: memref<16x16xbf16, #tpu.memory_space<vmem>>, %arg5: memref<16x16xbf16, #tpu.memory_space<vmem>>, %arg6: memref<16x16xf32, #tpu.memory_space<vmem>>, %arg7: memref<1x1x128xf32, #tpu.memory_space<vmem>>) attributes {dimension_semantics = [#tpu.dimension_semantics<parallel>], iteration_bounds = array<i64: 2>, scalar_prefetch = 0 : i64, scratch_operands = 0 : i64, tpu.core_type = #tpu.core_type<tc>, window_params = [{transform_indices = @transform_0, window_bounds = array<i64: 1, 2, 16, 16>}, {transform_indices = @transform_1, window_bounds = array<i64: 1, 2, 16, 16>}, {pipeline_mode = #tpu.pipeline_mode<synchronous>, transform_indices = @transform_2, window_bounds = array<i64: 32, 32>}, {pipeline_mode = #tpu.pipeline_mode<synchronous>, transform_indices = @transform_3, window_bounds = array<i64: 16, 16>}, {pipeline_mode = #tpu.pipeline_mode<synchronous>, transform_indices = @transform_4, window_bounds = array<i64: 16, 16>}, {pipeline_mode = #tpu.pipeline_mode<synchronous>, transform_indices = @transform_5, window_bounds = array<i64: 16, 16>}, {transform_indices = @transform_6, window_bounds = array<i64: 1, 1, 128>}]} {
    %c0 = arith.constant 0 : index
    %c0_0 = arith.constant 0 : index
    %0 = vector.load %arg4[%c0, %c0_0] : memref<16x16xbf16, #tpu.memory_space<vmem>>, vector<16x16xbf16>
    %c0_1 = arith.constant 0 : index
    %c0_2 = arith.constant 0 : index
    %1 = vector.load %arg5[%c0_1, %c0_2] : memref<16x16xbf16, #tpu.memory_space<vmem>>, vector<16x16xbf16>
    %c0_3 = arith.constant 0 : index
    %c0_4 = arith.constant 0 : index
    %2 = vector.load %arg3[%c0_3, %c0_4] : memref<32x32xbf16, #tpu.memory_space<vmem>>, vector<32x32xbf16>
    %cst = arith.constant 0.000000e+00 : f32
    %3 = vector.broadcast %cst : f32 to vector<16x16xf32>
    %c0_i32 = arith.constant 0 : i32
    %4 = arith.index_cast %c0_i32 : i32 to index
    %c0_5 = arith.constant 0 : index
    %c0_6 = arith.constant 0 : index
    %c0_7 = arith.constant 0 : index
    %5 = vector.load %arg1[%4, %c0_5, %c0_6, %c0_7] : memref<1x2x16x16xf32, #tpu.memory_space<vmem>>, vector<1x2x16x16xf32>
    %6 = vector.shape_cast %5 : vector<1x2x16x16xf32> to vector<2x16x16xf32>
    %7 = arith.index_cast %c0_i32 : i32 to index
    %c0_8 = arith.constant 0 : index
    %c0_9 = arith.constant 0 : index
    %c0_10 = arith.constant 0 : index
    %8 = vector.load %arg2[%7, %c0_8, %c0_9, %c0_10] : memref<1x2x16x16xf32, #tpu.memory_space<vmem>>, vector<1x2x16x16xf32>
    %9 = vector.shape_cast %8 : vector<1x2x16x16xf32> to vector<2x16x16xf32>
    %10 = arith.subf %6, %9 : vector<2x16x16xf32>
    %11 = vector.shape_cast %10 : vector<2x16x16xf32> to vector<32x16xf32>
    %12 = arith.truncf %11 : vector<32x16xf32> to vector<32x16xbf16>
    %cst_11 = arith.constant dense<0.000000e+00> : vector<32x16xf32>
    %13 = tpu.matmul %2, %12, %cst_11 {dimension_numbers = #tpu.dot_dimension_numbers<[1], [0], [0], [1], [0, 0, 1, 1], [], []>} : vector<32x32xbf16>, vector<32x16xbf16>, vector<32x16xf32> -> vector<32x16xf32>
    %14 = arith.truncf %13 : vector<32x16xf32> to vector<32x16xbf16>
    %cst_12 = arith.constant dense<0.000000e+00> : vector<32x16xf32>
    %15 = tpu.matmul %14, %0, %cst_12 {dimension_numbers = #tpu.dot_dimension_numbers<[1], [0], [0], [1], [0, 0, 1, 1], [], []>} : vector<32x16xbf16>, vector<16x16xbf16>, vector<32x16xf32> -> vector<32x16xf32>
    %cst_13 = arith.constant dense<0.000000e+00> : vector<32x16xf32>
    %16 = tpu.matmul %14, %1, %cst_13 {dimension_numbers = #tpu.dot_dimension_numbers<[1], [0], [0], [1], [0, 0, 1, 1], [], []>} : vector<32x16xbf16>, vector<16x16xbf16>, vector<32x16xf32> -> vector<32x16xf32>
    %17 = vector.extract_strided_slice %15 {offsets = [0, 0], sizes = [16, 16], strides = [1, 1]} : vector<32x16xf32> to vector<16x16xf32>
    %18 = vector.extract_strided_slice %16 {offsets = [16, 0], sizes = [16, 16], strides = [1, 1]} : vector<32x16xf32> to vector<16x16xf32>
    %19 = arith.subf %17, %18 : vector<16x16xf32>
    %20 = vector.extract_strided_slice %16 {offsets = [0, 0], sizes = [16, 16], strides = [1, 1]} : vector<32x16xf32> to vector<16x16xf32>
    %21 = vector.extract_strided_slice %15 {offsets = [16, 0], sizes = [16, 16], strides = [1, 1]} : vector<32x16xf32> to vector<16x16xf32>
    %22 = arith.addf %20, %21 : vector<16x16xf32>
    %23 = arith.mulf %19, %19 : vector<16x16xf32>
    %24 = arith.mulf %22, %22 : vector<16x16xf32>
    %25 = arith.addf %23, %24 : vector<16x16xf32>
    %26 = math.sqrt %25 : vector<16x16xf32>
    %27 = arith.addf %3, %26 : vector<16x16xf32>
    %c1_i32 = arith.constant 1 : i32
    %c0_14 = arith.constant 0 : index
    %c0_15 = arith.constant 0 : index
    %28 = vector.load %arg6[%c0_14, %c0_15] : memref<16x16xf32, #tpu.memory_space<vmem>>, vector<16x16xf32>
    %29 = arith.mulf %28, %27 : vector<16x16xf32>
    %30 = vector.shape_cast %29 : vector<16x16xf32> to vector<1x16x16xf32>
    %cst_16 = arith.constant dense<0.000000e+00> : vector<1xf32>
    %31 = vector.multi_reduction <add>, %30, %cst_16 [1, 2] : vector<1x16x16xf32> to vector<1xf32>
    %32 = vector.shape_cast %31 : vector<1xf32> to vector<1x1x1xf32>
    %33 = vector.extract %32[0, 0, 0] : f32 from vector<1x1x1xf32>
    %34 = vector.broadcast %33 : f32 to vector<1x1x128xf32>
    %c0_17 = arith.constant 0 : index
    %c0_18 = arith.constant 0 : index
    %c0_19 = arith.constant 0 : index
    %35 = vector.load %arg7[%c0_17, %c0_18, %c0_19] : memref<1x1x128xf32, #tpu.memory_space<vmem>>, vector<1x1x128xf32>
    tpu.vector_store %arg7[%c0_17, %c0_18, %c0_19], %34 {strides = array<i32>} : memref<1x1x128xf32, #tpu.memory_space<vmem>>, vector<1x1x128xf32>,
    return
  }
  func.func @transform_0(%arg0: i32) -> (i32, i32, i32, i32) {
    %c0_i32 = arith.constant 0 : i32
    %c0_i32_0 = arith.constant 0 : i32
    %c0_i32_1 = arith.constant 0 : i32
    %c0_i32_2 = arith.constant 0 : i32
    return %arg0, %c0_i32, %c0_i32_0, %c0_i32_1 : i32, i32, i32, i32
  }
  func.func @transform_1(%arg0: i32) -> (i32, i32, i32, i32) {
    %c0_i32 = arith.constant 0 : i32
    %c0_i32_0 = arith.constant 0 : i32
    %c0_i32_1 = arith.constant 0 : i32
    %c0_i32_2 = arith.constant 0 : i32
    return %arg0, %c0_i32, %c0_i32_0, %c0_i32_1 : i32, i32, i32, i32
  }
  func.func @transform_2(%arg0: i32) -> (i32, i32) {
    %c0_i32 = arith.constant 0 : i32
    %c0_i32_0 = arith.constant 0 : i32
    %c0_i32_1 = arith.constant 0 : i32
    return %c0_i32, %c0_i32_0 : i32, i32
  }
  func.func @transform_3(%arg0: i32) -> (i32, i32) {
    %c0_i32 = arith.constant 0 : i32
    %c0_i32_0 = arith.constant 0 : i32
    %c0_i32_1 = arith.constant 0 : i32
    return %c0_i32, %c0_i32_0 : i32, i32
  }
  func.func @transform_4(%arg0: i32) -> (i32, i32) {
    %c0_i32 = arith.constant 0 : i32
    %c0_i32_0 = arith.constant 0 : i32
    %c0_i32_1 = arith.constant 0 : i32
    return %c0_i32, %c0_i32_0 : i32, i32
  }
  func.func @transform_5(%arg0: i32) -> (i32, i32) {
    %c0_i32 = arith.constant 0 : i32
    %c0_i32_0 = arith.constant 0 : i32
    %c0_i32_1 = arith.constant 0 : i32
    return %c0_i32, %c0_i32_0 : i32, i32
  }
  func.func @transform_6(%arg0: i32) -> (i32, i32, i32) {
    %c0_i32 = arith.constant 0 : i32
    %c0_i32_0 = arith.constant 0 : i32
    %c0_i32_1 = arith.constant 0 : i32
    return %arg0, %c0_i32, %c0_i32_0 : i32, i32, i32
  }
}

</mosaic_0001>

<bundles_post_ra>
// kernel: tpu_custom_call.1
= control target key start
LH: loop header
LB: loop body
LE: loop exit
PB: predicated region body
PF: predicated region fallthrough
CT: control target
= control target key end

     0   :  { %s1494_s0 = inlined_call_operand.hbm [shape: f32[2,2,16,16], index: 0, kind: input, shape index: {}]   ;;  %s1495_s1 = inlined_call_operand.hbm [shape: f32[2,2,16,16], index: 1, kind: input, shape index: {}]   ;;  %s1496_s2 = inlined_call_operand.hbm [shape: bf16[32,32], index: 2, kind: input, shape index: {}]   ;;  %s1497_s3 = inlined_call_operand.hbm [shape: bf16[16,16], index: 3, kind: input, shape index: {}]   ;;  %s1498_s4 = inlined_call_operand.hbm [shape: bf16[16,16], index: 4, kind: input, shape index: {}]   ;;  %s1499_s5 = inlined_call_operand.vmem [shape: f32[16,16], index: 5, kind: input, shape index: {}]   ;;  %s1500_s6 = inlined_call_operand.hbm [shape: f32[2,1,128], index: 6, kind: output, shape index: {}]  }
   0x1   :  { %1504 = sst [smem:[#allocation17_spill]] %s1494_s0 }
   0x2   :  { %1505 = sst [smem:[#allocation18_spill]] %s1496_s2 }
   0x3   :  { %1506 = sst [smem:[#allocation19_spill]] %s1497_s3 }
   0x4   :  { %11 = vsyncpa [#allocation3], 0 }
   0x5   :  { %13 = vsyncpa [#allocation3 + $0x1], 0 }
   0x6   :  { %14 = vsyncpa [#allocation6], 0 }
   0x7   :  { %16 = vsyncpa [#allocation6 + $0x1], 0 }
   0x8   :  { %17 = vsyncpa [#allocation9], 0 }
   0x9   :  { %18 = vsyncpa [#allocation4], 0 }
   0xa   :  { %20 = vsyncpa [#allocation4 + $0x1], 0  ;;  %s1162_s21 = smov 0   ;;  %s1164_s22 = smov 0  }
   0xb   :  { %s1166_s23 = smov 0   ;;  %s1168_s24 = smov 0  }
   0xc LB: > { %s1183_s25 = sadd.s32 4294967295, %s1115_s24   ;;  %s734_s26 = sadd.s32 4294967294, %s1115_s24   ;;  %s1115_s24 = sphi %s1168_s24, %s1529_s24   ;;  %s1111_s23 = sphi %s1166_s23, %s1528_s23   ;;  %s1107_s22 = sphi %s1164_s22, %s1527_s22   ;;  %s1103_s21 = sphi %s1162_s21, %s1526_s21  }
   0xd   : > { %p46_p0 = scmp.ne.s32.totalorder %s1107_s22, %s1103_s21  ;;  %p1501_p1 = scmp.eq.s32.totalorder %s1183_s25, 0 }
   0xe   : > { %p186_p3 = scmp.eq.s32.totalorder %s734_s26, 1  ;;  %p735_p5 = scmp.ge.s32.totalorder %s1115_s24, 1 }
   0xf   : > { %p1192_p4 = por %p1501_p1, %p46_p0  ;;  %p193_p7 = scmp.lt.s32.totalorder %s1115_s24, 3 }
  0x10   : > { %p1197_p6 = por %p186_p3, %p46_p0  ;;  %s1117_s30 = smov [#allocation7]  }
  0x11   : > { %s1507_s27 = scalar_select %p1192_p4, 1, 0 }
  0x12   : > { %s1508_s28 = scalar_select %p1197_p6, 1, 0 }
  0x13   : > { %p1202_p8 = pnand %p735_p5, %p193_p7  ;;  %s205_s7 = sshll.u32 %s1117_s30, 4  ;;  %s1206_s7 = int_to_ptr.vmem [resolvable:$true] %s205_s7 }
  0x14   : > { %s1118_s9 = smov [#allocation8]   ;;  %s1119_s11 = smov [#allocation10]  }
  0x15   : > { %s1509_s29 = scalar_select %p1202_p8, 1, 0 }
  0x16   : > { %p817_p9 = pneg %p1202_p8  ;;  %s218_s10 = sshll.u32 %s1118_s9, 4  ;;  %s1217_s10 = int_to_ptr.vmem [resolvable:$true] %s218_s10 }
  0x17   : > { %s1219_s12 = sshll.u32 %s1119_s11, 4  ;;  %s1511_s2 = sld [smem:[#allocation18_spill]]  ;;  %s232_s12 = int_to_ptr.vmem [resolvable:$true] %s1219_s12 }
  0x18   : > { %p1213_p11 = pnand %p817_p9, %p1501_p1 }
  0x1a   : > { %p1229_p13 = pneg %p1213_p11 }
  0x1d   : > { %s893_s15 = scalar_lea.hbm %s1511_s2, 256 }
  0x1e   : > { %p894_p12 = scmp.ne.s32.totalorder %s1511_s2, %s893_s15  ;;  %p900_p5 = scmp.lt.u32.totalorder %s893_s15, %s1511_s2 }
  0x20   : > { %p896_p0 = pnand %p1229_p13, %p894_p12 }
  0x22   : > { %p897_p3 = pneg %p896_p0 }
  0x24   : > { %p902_p7 = pnand %p900_p5, %p897_p3 }
  0x26   : > { %905 = shalt.err (!%p902_p7)
}
  0x27   : > { %s906_s26 = scalar_lea.vmem %s1206_s7, 256  ;;  %p914_p2 = scmp.lt.s32.totalorder %s1206_s7, %s1206_s7 }
  0x28   : > { %p907_p9 = scmp.ne.s32.totalorder %s1206_s7, %s906_s26  ;;  %p915_p6 = scmp.lt.s32.totalorder %s906_s26, %s906_s26 }
  0x2a   : > { %p909_p10 = pnand %p907_p9, %p1229_p13  ;;  %p916_p12 = por %p915_p6, %p914_p2 }
  0x2c   : > { %p910_p1 = pneg %p909_p10 }
  0x2e   : > { %p917_p0 = pnand %p916_p12, %p910_p1 }
  0x30   : > { %920 = shalt.err (!%p917_p0)
}
  0x31   : > { %s1120_s30 = smov 64   ;;  %s1121_s9 = smov 4  }
  0x32   : > { %820 = dma.hbm_to_vmem [thread:$0]  (!%p1213_p11), %s1511_s2, 256, %s1206_s7, [#allocation6], %s1120_s30, %s1120_s30, %s1121_s9  }
  0x33   : > { %s1513_s3 = sld [smem:[#allocation19_spill]] }
  0x39   : > { %s921_s16 = scalar_lea.hbm %s1513_s3, 128 }
  0x3a   : > { %p922_p1 = scmp.ne.s32.totalorder %s1513_s3, %s921_s16  ;;  %p928_p10 = scmp.lt.u32.totalorder %s921_s16, %s1513_s3 }
  0x3c   : > { %p924_p2 = pnand %p922_p1, %p1229_p13 }
  0x3e   : > { %p925_p6 = pneg %p924_p2 }
  0x40   : > { %p930_p3 = pnand %p928_p10, %p925_p6 }
  0x42   : > { %933 = shalt.err (!%p930_p3)
}
  0x43   : > { %s934_s7 = scalar_lea.vmem %s1217_s10, 128  ;;  %p942_p12 = scmp.lt.s32.totalorder %s1217_s10, %s1217_s10 }
  0x44   : > { %p935_p5 = scmp.ne.s32.totalorder %s1217_s10, %s934_s7  ;;  %p943_p0 = scmp.lt.s32.totalorder %s934_s7, %s934_s7 }
  0x46   : > { %p937_p7 = pnand %p935_p5, %p1229_p13  ;;  %p944_p1 = por %p943_p0, %p942_p12 }
  0x48   : > { %p938_p9 = pneg %p937_p7 }
  0x4a   : > { %p945_p2 = pnand %p944_p1, %p938_p9 }
  0x4c   : > { %948 = shalt.err (!%p945_p2)
}
  0x4d   : > { %823 = dma.hbm_to_vmem [thread:$0]  (!%p1213_p11), %s1513_s3, 128, %s1217_s10, [#allocation9], %s1120_s30, %s1120_s30, %s1121_s9  }
  0x4e   : > { %s949_s16 = scalar_lea.hbm %s1498_s4, 128 }
  0x4f   : > { %p950_p6 = scmp.ne.s32.totalorder %s1498_s4, %s949_s16  ;;  %p956_p5 = scmp.lt.u32.totalorder %s949_s16, %s1498_s4 }
  0x51   : > { %p952_p10 = pnand %p950_p6, %p1229_p13 }
  0x53   : > { %p953_p3 = pneg %p952_p10 }
  0x55   : > { %p958_p7 = pnand %p956_p5, %p953_p3 }
  0x57   : > { %961 = shalt.err (!%p958_p7)
}
  0x58   : > { %s962_s7 = scalar_lea.vmem %s232_s12, 128  ;;  %p970_p1 = scmp.lt.s32.totalorder %s232_s12, %s232_s12 }
  0x59   : > { %p963_p9 = scmp.ne.s32.totalorder %s232_s12, %s962_s7  ;;  %p971_p2 = scmp.lt.s32.totalorder %s962_s7, %s962_s7 }
  0x5b   : > { %p965_p12 = pnand %p963_p9, %p1229_p13  ;;  %p972_p4 = por %p971_p2, %p970_p1 }
  0x5d   : > { %p966_p0 = pneg %p965_p12 }
  0x5f   : > { %p973_p8 = pnand %p972_p4, %p966_p0 }
  0x61   : > { %976 = shalt.err (!%p973_p8)
}
  0x62   : > { %826 = dma.hbm_to_vmem [thread:$0]  (!%p1213_p11), %s1498_s4, 128, %s232_s12, [#allocation9], %s1120_s30, %s1120_s30, %s1121_s9  }
  0x63   : > { %s1302_s8 = sadd.s32 1, %s1115_s24   ;;  %s33_s13 = sadd.s32 1, %s1111_s23 }
  0x64   : > { %s30_s18 = ssub.s32 %s1115_s24, %s1302_s8  ;;  %p40_p8 = scmp.ne.s32.totalorder %s1111_s23, %s1107_s22 }
  0x65   : > { %p31_p4 = scmp.eq.s32.totalorder %s30_s18, 0  ;;  %p41_p13 = scmp.eq.s32.totalorder %s1115_s24, 0 }
  0x66   : > { %p841_p6 = scmp.lt.s32.totalorder %s1115_s24, 2  ;;  %p1514_p3 = scmp.eq.s32.totalorder %s1183_s25, 1 }
  0x67   : > { %s1312_s14 = scalar_select %p31_p4, %s1111_s23, %s33_s13  }
  0x68   : > { %p42_p10 = por %p41_p13, %p40_p8  ;;  %p1316_p5 = por %p1514_p3, %p40_p8 }
  0x69   : > { %s248_s16 = sand.u32 1, %s1111_s23   ;;  %s765_s17 = sshll.u32 %s1115_s24, 9 }
  0x6a   : > { %s1322_s12 = sshll.u32 %s248_s16, 5  ;;  %s1516_s0 = sld [smem:[#allocation17_spill]] }
  0x6b   : > { %s252_s20 = scalar_lea.vmem [#allocation2], %s1322_s12  ;;  %p1332_p11 = pnand %p841_p6, %p42_p10 }
  0x6c   : > { %s259_s26 = sshll.u32 %s252_s20, 4  ;;  %s1338_s10 = scalar_lea.sflag [#allocation3], %s248_s16  ;;  %s1336_s26 = int_to_ptr.vmem [resolvable:$true] %s259_s26 }
  0x6d   : > { %p979_p9 = pneg %p1332_p11 }
  0x70   : > { %s1329_s19 = scalar_lea.hbm %s1516_s0, %s765_s17  ;;  %s982_s30 = scalar_lea.hbm %s1516_s0, 1024 }
  0x71   : > { %s977_s11 = scalar_lea.hbm %s1329_s19, 512  ;;  %p983_p1 = scmp.lt.u32.totalorder %s1329_s19, %s1516_s0 }
  0x72   : > { %p978_p7 = scmp.ne.s32.totalorder %s1329_s19, %s977_s11  ;;  %p984_p2 = scmp.lt.u32.totalorder %s982_s30, %s977_s11 }
  0x73   : > { %p986_p8 = scmp.lt.u32.totalorder %s977_s11, %s1329_s19 }
  0x74   : > { %p980_p12 = pnand %p979_p9, %p978_p7  ;;  %p985_p4 = por %p984_p2, %p983_p1 }
  0x76   : > { %p981_p0 = pneg %p980_p12  ;;  %p987_p13 = por %p986_p8, %p985_p4 }
  0x78   : > { %p988_p6 = pnand %p987_p13, %p981_p0 }
  0x7a   : > { %991 = shalt.err (!%p988_p6)
}
  0x7b   : > { %s992_s16 = scalar_lea.vmem %s1336_s26, 512  ;;  %s1122_s18 = smov [#allocation2]  }
  0x7c   : > { %p993_p10 = scmp.ne.s32.totalorder %s1336_s26, %s992_s16  ;;  %s997_s13 = sshll.u32 %s1122_s18, 4  ;;  %s998_s13 = int_to_ptr.vmem [resolvable:$false] %s997_s13 }
  0x7d   : > { %s999_s9 = scalar_lea.vmem %s998_s13, 1024  ;;  %p1000_p12 = scmp.lt.s32.totalorder %s1336_s26, %s998_s13 }
  0x7e   : > { %p995_p3 = pnand %p993_p10, %p979_p9  ;;  %p1001_p1 = scmp.lt.s32.totalorder %s999_s9, %s992_s16 }
  0x80   : > { %p996_p7 = pneg %p995_p3  ;;  %p1002_p2 = por %p1001_p1, %p1000_p12 }
  0x82   : > { %p1003_p4 = pnand %p1002_p2, %p996_p7 }
  0x84   : > { %1006 = shalt.err (!%p1003_p4)
}
  0x85   : > { %s1123_s11 = smov 128   ;;  %s1124_s30 = smov 8  }
  0x86   : > { %830 = dma.hbm_to_vmem [thread:$0]  (!%p1332_p11), %s1329_s19, 512, %s1336_s26, %s1338_s10, %s1123_s11, %s1123_s11, %s1124_s30  }
  0x87   : > { %s1374_s18 = scalar_lea.hbm %s1495_s1, %s765_s17  ;;  %s273_s13 = scalar_lea.vmem [#allocation5], %s1322_s12 }
  0x88   : > { %s280_s9 = sshll.u32 %s273_s13, 4  ;;  %s269_s0 = sand.u32 1, %s1115_s24   ;;  %s1378_s9 = int_to_ptr.vmem [resolvable:$true] %s280_s9 }
  0x89   : > { %s1380_s2 = scalar_lea.sflag [#allocation6], %s269_s0  ;;  %s1007_s3 = scalar_lea.hbm %s1374_s18, 512 }
  0x8a   : > { %p1008_p0 = scmp.ne.s32.totalorder %s1374_s18, %s1007_s3  ;;  %s1012_s26 = scalar_lea.hbm %s1495_s1, 1024 }
  0x8b   : > { %p1013_p6 = scmp.lt.u32.totalorder %s1374_s18, %s1495_s1  ;;  %p1014_p10 = scmp.lt.u32.totalorder %s1012_s26, %s1007_s3 }
  0x8c   : > { %p1010_p8 = pnand %p1008_p0, %p979_p9  ;;  %p1016_p7 = scmp.lt.u32.totalorder %s1007_s3, %s1374_s18 }
  0x8d   : > { %p1015_p3 = por %p1014_p10, %p1013_p6 }
  0x8e   : > { %p1011_p13 = pneg %p1010_p8 }
  0x8f   : > { %p1017_p12 = por %p1016_p7, %p1015_p3 }
  0x91   : > { %p1018_p1 = pnand %p1017_p12, %p1011_p13 }
  0x93   : > { %1021 = shalt.err (!%p1018_p1)
}
  0x94   : > { %s1022_s0 = scalar_lea.vmem %s1378_s9, 512  ;;  %s1125_s12 = smov [#allocation5]  }
  0x95   : > { %p1023_p2 = scmp.ne.s32.totalorder %s1378_s9, %s1022_s0  ;;  %s1027_s16 = sshll.u32 %s1125_s12, 4  ;;  %s1028_s16 = int_to_ptr.vmem [resolvable:$false] %s1027_s16 }
  0x96   : > { %s1029_s13 = scalar_lea.vmem %s1028_s16, 1024  ;;  %p1030_p8 = scmp.lt.s32.totalorder %s1378_s9, %s1028_s16 }
  0x97   : > { %p1025_p4 = pnand %p1023_p2, %p979_p9  ;;  %p1031_p6 = scmp.lt.s32.totalorder %s1029_s13, %s1022_s0 }
  0x99   : > { %p1026_p0 = pneg %p1025_p4  ;;  %p1032_p10 = por %p1031_p6, %p1030_p8 }
  0x9b   : > { %p1033_p3 = pnand %p1032_p10, %p1026_p0 }
  0x9d   : > { %1036 = shalt.err (!%p1033_p3)
}
  0x9e   : > { %833 = dma.hbm_to_vmem [thread:$0]  (!%p1332_p11), %s1374_s18, 512, %s1378_s9, %s1380_s2, %s1123_s11, %s1123_s11, %s1124_s30  }
  0x9f   : > { %p1518_p9 = scmp.ne.s32.totalorder %s1509_s29, 0 }
  0xa0   : > { %s1412_s3 = sand.u32 (!%p1518_p9), 1, %s1107_s22   ;;  %p1519_p13 = scmp.ne.s32.totalorder (!%p1518_p9), %s1507_s27, 0 }
  0xa1   : > { %292 = sbr.rel (%p1518_p9) target bundleno = 879 (0x36f), region = 44  ;;  %s747_s19 = sshll.u32 (!%p1518_p9), %s1412_s3, 5 }
  0xa2   : > { %s295_s17 = scalar_lea.sflag (!%p1518_p9), [#allocation3], %s1412_s3  ;;  %s298_s26 = scalar_lea.vmem (!%p1518_p9), [#allocation2], %s747_s19 }
  0xa8   : > { %1082 = dma.done.wait (%p1519_p13), %s295_s17, 512  }
  0xa9   : > { %1084 = vsyncadd (%p1519_p13), %s295_s17, 4294966784  ;;  %s303_s2 = sand.u32 1, %s1183_s25   ;;  %s307_s29 = scalar_lea.vmem [#allocation5], %s747_s19 }
  0xaa   : > { %s304_s7 = scalar_lea.sflag [#allocation6], %s303_s2 }
  0xab   : > { %1086 = dma.done.wait (%p1519_p13), %s304_s7, 512  }
  0xac   : > { %1088 = vsyncadd (%p1519_p13), %s304_s7, 4294966784  ;;  %p1520_p11 = scmp.eq.s32.totalorder %s1183_s25, 0 }
  0xae   : > { %1090 = dma.done.wait (%p1520_p11), [#allocation6], 256   ;;  %p1521_p7 = pmov %p1520_p11 }
  0xb0   : > { %1092 = vsyncadd (%p1521_p7), [#allocation6], 4294967040  ;;  %p1522_p12 = pmov %p1521_p7 }
  0xb1   : > { %p1523_p1 = pmov %p1521_p7 }
  0xb2   : > { %1094 = dma.done.wait (%p1522_p12), [#allocation9], 256  }
  0xb3   : > { %1096 = vsyncadd (%p1523_p1), [#allocation9], 4294967040  ;;  %v361_v0 = vld [vmem:[%s298_s26] sm:$0xff]  ;;  %v362_v1 = vld [vmem:[%s298_s26 + $0x8] sm:$0xff]  ;;  %vm385_vm0 = vcmask 261120   ;;  %vm449_vm1 = vcmask 130048  }
  0xb4   : > { %v365_v2 = vld [vmem:[%s307_s29] sm:$0xff]  ;;  %v366_v3 = vld [vmem:[%s307_s29 + $0x8] sm:$0xff]  ;;  %v363_v5 = vld [vmem:[%s298_s26 + $0x10] sm:$0xff]  ;;  %s351_s9 = scalar_lea.vmem [#allocation11], %s1412_s3  ;;  %s762_s20 = sshll.u32 %s1183_s25, 4 }
  0xb5   : > { %v369_v4 = vsub.f32 %v361_v0, %v365_v2  ;;  %v364_v6 = vld [vmem:[%s298_s26 + $0x18] sm:$0xff]  ;;  %v370_v7 = vsub.f32 %v362_v1, %v366_v3  ;;  %v367_v8 = vld [vmem:[%s307_s29 + $0x10] sm:$0xff]  ;;  %v885_v12 = vld [vmem:[#allocation7] sm:$0xff]   ;;  %s617_s10 = sshll.u32 %s351_s9, 4  ;;  %s1452_s13 = scalar_lea.hbm %s1500_s6, %s762_s20  ;;  %s1447_s10 = int_to_ptr.vmem [resolvable:$true] %s617_s10 }
  0xb6   : > { %v368_v9 = vld [vmem:[%s307_s29 + $0x18] sm:$0xff]  ;;  %v371_v10 = vsub.f32 %v363_v5, %v367_v8  ;;  %781 = vmatprep.mubr.msk.bf16.mxu0 %vm385_vm0, %v885_v12  ;;  %v886_v15 = vld [vmem:[#allocation7 + $0x8] sm:$0xff]   ;;  %v887_v16 = vld [vmem:[#allocation8] sm:$0xff]   ;;  %s605_s19 = scalar_lea.sflag [#allocation4], %s1412_s3  ;;  %s1037_s17 = scalar_lea.vmem %s1447_s10, 16 }
  0xb7   : > { %v372_v11 = vsub.f32 %v364_v6, %v368_v9  ;;  %v373_v13 = vpack.c.bf16 %v370_v7, %v369_v4  ;;  %785 = vmatprep.subr.bf16.mxu1 %v887_v16  ;;  %v888_v17 = vld [vmem:[#allocation10] sm:$0xff]   ;;  %v586_v46 = vld [vmem:[%s1499_s5] sm:$0xff]  ;;  %v587_v51 = vld [vmem:[%s1499_s5 + $0x8] sm:$0xff]  ;;  %p1038_p2 = scmp.ne.s32.totalorder %s1447_s10, %s1037_s17  ;;  %s1126_s25 = smov [#allocation11]  }
  0xb8   : > { %786 = vmatpush3.bf16.msra.mxu1 %v887_v16  ;;  %s1041_s26 = sshll.u32 %s1126_s25, 4  ;;  %s1042_s26 = int_to_ptr.vmem [resolvable:$false] %s1041_s26 }
  0xb9   : > { %v374_v14 = vpack.c.bf16 %v372_v11, %v371_v10  ;;  %777 = vmatprep.subr.bf16.mxu0 %v373_v13  ;;  %791 = vmatprep.subr.bf16.mxu1 %v888_v17  ;;  %p1039_p4 = pnand %p1038_p2, %p1316_p5  ;;  %s1043_s2 = scalar_lea.vmem %s1042_s26, 32 }
  0xba   : > { %778 = vmatpush3.bf16.msra.mxu0 %v373_v13  ;;  %p1044_p8 = scmp.lt.s32.totalorder %s1447_s10, %s1042_s26  ;;  %p1045_p6 = scmp.lt.s32.totalorder %s1043_s2, %s1037_s17 }
  0xbb   : > { %779 = vmatprep.subr.bf16.mxu0 %v374_v14  ;;  %p1040_p0 = pneg %p1039_p4 }
  0xbc   : > { %p1046_p10 = por %p1045_p6, %p1044_p8 }
  0xbe   : > { %780 = vmatpush3.bf16.msra.mxu0 %v374_v14  ;;  %p1047_p3 = pnand %p1046_p10, %p1040_p0 }
  0xc1   : > { %782 = vmatmul.mubr.msk.bf16.vlgmr.msra.gmra.mrb[0].mxu0 %vm385_vm0, %v886_v15 }
 0x194   : > { %v783_v18 = vpop.f32.mrb[0].mxu0 }
 0x195   : > { %v426_v19 = vpop.f32.mrb[1].mxu0 }
 0x196   : > { %v784_v20 = vpop.f32.mrb[2].mxu0 }
 0x197   : > { %v442_v21 = vpack.c.bf16 %v784_v20, %v783_v18  ;;  %v429_v22 = vpop.f32.mrb[3].mxu0 }
 0x198   : > { %v441_v23 = vpack.c.bf16 %v429_v22, %v426_v19 }
 0x19a   : > { %787 = vmatprep.mubr.msk.bf16.mxu1 %vm449_vm1, %v441_v23 }
 0x19b   : > { %788 = vmatmul.mubr.msk.bf16.vlgmr.msra.gmra.mrb[0].mxu1 %vm449_vm1, %v442_v21 }
 0x19c   : > { %792 = vmatpush3.bf16.msra.mxu1 %v888_v17  ;;  %793 = vmatprep.mubr.msk.bf16.mxu1 %vm449_vm1, %v441_v23 }
 0x1a3   : > { %794 = vmatmul.mubr.msk.bf16.vlgmr.msra.gmra.mrb[4].mxu1 %vm449_vm1, %v442_v21 }
 0x26e   : > { %v789_v24 = vpop.f32.mrb[0].mxu1 }
 0x26f   : > { %v490_v25 = vpop.f32.mrb[1].mxu1 }
 0x270   : > { %v790_v26 = vpop.f32.mrb[2].mxu1 }
 0x271   : > { %v493_v27 = vpop.f32.mrb[3].mxu1 }
 0x276   : > { %v795_v28 = vpop.f32.mrb[4].mxu1 }
 0x277   : > { %v560_v29 = vsub.f32 %v490_v25, %v795_v28  ;;  %v545_v30 = vpop.f32.mrb[5].mxu1 }
 0x278   : > { %v562_v31 = vadd.f32 %v789_v24, %v545_v30  ;;  %v796_v32 = vpop.f32.mrb[6].mxu1 }
 0x279   : > { %v564_v33 = vmul.f32 %v560_v29, %v560_v29  ;;  %v561_v34 = vsub.f32 %v493_v27, %v796_v32  ;;  %v548_v35 = vpop.f32.mrb[7].mxu1 }
 0x27a   : > { %v566_v36 = vmul.f32 %v562_v31, %v562_v31  ;;  %v563_v37 = vadd.f32 %v790_v26, %v548_v35 }
 0x27b   : > { %v565_v38 = vmul.f32 %v561_v34, %v561_v34 }
 0x27c   : > { %v568_v39 = vadd.f32 %v566_v36, %v564_v33  ;;  %v567_v40 = vmul.f32 %v563_v37, %v563_v37 }
 0x27e   : > { %889 = vrsqrt.f32 %v568_v39  ;;  %v569_v41 = vadd.f32 %v567_v40, %v565_v38  ;;  %vm572_vm2 = vcmp.eq.f32.partialorder %v568_v39, inf  ;;  %v575_v45 = vand.u32 2147483648, %v568_v39 }
 0x27f   : > { %vm574_vm3 = vcmp.eq.f32.partialorder %v568_v39, 0.0 }
 0x280   : > { %891 = vrsqrt.f32 %v569_v41  ;;  %vm579_vm4 = vcmp.eq.f32.partialorder %v569_v41, inf  ;;  %v582_v50 = vand.u32 2147483648, %v569_v41  ;;  %vm581_vm5 = vcmp.eq.f32.partialorder %v569_v41, 0.0 }
 0x288   : > { %v890_v42 = vpop.eup %889 }
 0x289   : > { %v571_v43 = vmul.f32 %v890_v42, %v568_v39 }
 0x28a   : > { %v892_v44 = vpop.eup %891 }
 0x28b   : > { %v573_v47 = vsel %vm572_vm2, %v568_v39, %v571_v43  ;;  %v578_v48 = vmul.f32 %v892_v44, %v569_v41 }
 0x28c   : > { %v576_v49 = vsel %vm574_vm3, %v575_v45, %v573_v47 }
 0x28d   : > { %v580_v52 = vsel %vm579_vm4, %v569_v41, %v578_v48  ;;  %v588_v53 = vmul.f32 %v586_v46, %v576_v49 }
 0x28e   : > { %v583_v54 = vsel %vm581_vm5, %v582_v50, %v580_v52 }
 0x28f   : > { %v589_v55 = vmul.f32 %v587_v51, %v583_v54  ;;  %v590_v56 = vsel %vm449_vm1, %v588_v53, 0.0 }
 0x291   : > { %v591_v57 = vsel %vm449_vm1, %v589_v55, 0.0 }
 0x292   : > { %v592_v58 = vadd.f32 %v591_v57, %v590_v56 }
 0x294   : > { %593 = vadd.xlane.f32.xlu0 %v592_v58 }
 0x321   : > { %v594_v59 = vpop.xlane.xlu0 %593 }
 0x322   : > { %v595_v60 = vrot.slane %v594_v59, 4 }
 0x324   : > { %v596_v61 = vadd.f32 %v595_v60, %v594_v59 }
 0x326   : > { %v597_v62 = vrot.slane %v596_v61, 2 }
 0x328   : > { %v598_v63 = vadd.f32 %v597_v62, %v596_v61 }
 0x32a   : > { %v599_v0 = vrot.slane %v598_v63, 1 }
 0x32c   : > { %v600_v1 = vadd.f32 %v599_v0, %v598_v63 }
 0x32e   : > { %797 = vpush %v600_v1 }
 0x35f   : > { %s798_s0 = spop %797 }
 0x360   : > { %v602_v2 = vstv %s798_s0 }
 0x361   : > { %603 = vst [vmem:[%s351_s9] sm:$0x1] %v602_v2 }
 0x362   : > { %1050 = shalt.err (!%p1047_p3)
}
 0x363   : > { %s1051_s3 = scalar_lea.hbm %s1452_s13, 16  ;;  %s1055_s27 = scalar_lea.hbm %s1500_s6, 32 }
 0x364   : > { %p1052_p9 = scmp.ne.s32.totalorder %s1452_s13, %s1051_s3  ;;  %p1056_p7 = scmp.lt.u32.totalorder %s1452_s13, %s1500_s6 }
 0x365   : > { %p1057_p12 = scmp.lt.u32.totalorder %s1055_s27, %s1051_s3  ;;  %p1059_p2 = scmp.lt.u32.totalorder %s1051_s3, %s1452_s13 }
 0x366   : > { %p1053_p13 = pnand %p1052_p9, %p1316_p5 }
 0x367   : > { %p1058_p1 = por %p1057_p12, %p1056_p7 }
 0x368   : > { %p1054_p11 = pneg %p1053_p13 }
 0x369   : > { %p1060_p4 = por %p1059_p2, %p1058_p1 }
 0x36b   : > { %p1061_p0 = pnand %p1060_p4, %p1054_p11 }
 0x36d   : > { %1064 = shalt.err (!%p1061_p0)
}
 0x36e   : > { %815 = dma.vmem_to_hbm [thread:$0]  (%p1316_p5), %s1447_s10, 16, %s1452_s13, %s605_s19  }
 0x36f PF: > { %s629_s18 = sand.u32 1, %s1103_s21   ;;  %p1524_p8 = scmp.ne.s32.totalorder %s1508_s28, 0 }
 0x370   : > { %p1525_p6 = scmp.ge.s32.totalorder %s1115_s24, 2  ;;  %s630_s9 = scalar_lea.sflag [#allocation4], %s629_s18 }
 0x372   : > { %p835_p10 = pnand %p1525_p6, %p1524_p8 }
 0x374   : > { %1098 = dma.done.wait (!%p835_p10), %s630_s9, 16  }
 0x375   : > { %1100 = vsyncadd (!%p835_p10), %s630_s9, 4294967280  ;;  %p23_p3 = scmp.ge.s32.totalorder %s1302_s8, 4   ;;  %s1526_s21 = smov %s1107_s22 }
 0x376   : > { %s1527_s22 = smov %s1111_s23  ;;  %s1528_s23 = smov %s1312_s14 }
 0x377   : > { %s1529_s24 = smov %s1302_s8  ;;  %25 = sbr.rel (!%p23_p3) target bundleno = 12 (0xc), region = 114 }
 0x37e   :  { %634 = vsyncpa [#allocation3], 1 }
 0x37f   :  { %636 = vsyncpa [#allocation3 + $0x1], 1 }
 0x380   :  { %637 = vsyncpa [#allocation6], 1 }
 0x381   :  { %639 = vsyncpa [#allocation6 + $0x1], 1 }
 0x382   :  { %640 = vsyncpa [#allocation9], 1 }
 0x383   :  { %641 = vsyncpa [#allocation4], 1 }
 0x384   :  { %643 = vsyncpa [#allocation4 + $0x1], 1 }

// kernel: tpu_custom_call.1
= control target key start
LH: loop header
LB: loop body
LE: loop exit
PB: predicated region body
PF: predicated region fallthrough
CT: control target
= control target key end

     0   :  { %s1494_s0 = inlined_call_operand.hbm [shape: f32[2,2,16,16], index: 0, kind: input, shape index: {}]   ;;  %s1495_s1 = inlined_call_operand.hbm [shape: f32[2,2,16,16], index: 1, kind: input, shape index: {}]   ;;  %s1496_s2 = inlined_call_operand.hbm [shape: bf16[32,32], index: 2, kind: input, shape index: {}]   ;;  %s1497_s3 = inlined_call_operand.hbm [shape: bf16[16,16], index: 3, kind: input, shape index: {}]   ;;  %s1498_s4 = inlined_call_operand.hbm [shape: bf16[16,16], index: 4, kind: input, shape index: {}]   ;;  %s1499_s5 = inlined_call_operand.vmem [shape: f32[16,16], index: 5, kind: input, shape index: {}]   ;;  %s1500_s6 = inlined_call_operand.hbm [shape: f32[2,1,128], index: 6, kind: output, shape index: {}]  }
   0x1   :  { %1504 = sst [smem:[#allocation17_spill]] %s1494_s0 }
   0x2   :  { %1505 = sst [smem:[#allocation18_spill]] %s1496_s2 }
   0x3   :  { %1506 = sst [smem:[#allocation19_spill]] %s1497_s3 }
   0x4   :  { %11 = vsyncpa [#allocation3], 0 }
   0x5   :  { %13 = vsyncpa [#allocation3 + $0x1], 0 }
   0x6   :  { %14 = vsyncpa [#allocation6], 0 }
   0x7   :  { %16 = vsyncpa [#allocation6 + $0x1], 0 }
   0x8   :  { %17 = vsyncpa [#allocation9], 0 }
   0x9   :  { %18 = vsyncpa [#allocation4], 0 }
   0xa   :  { %20 = vsyncpa [#allocation4 + $0x1], 0  ;;  %s1162_s21 = smov 0   ;;  %s1164_s22 = smov 0  }
   0xb   :  { %s1166_s23 = smov 0   ;;  %s1168_s24 = smov 0  }
   0xc LB: > { %s1183_s25 = sadd.s32 4294967295, %s1115_s24   ;;  %s734_s26 = sadd.s32 4294967294, %s1115_s24   ;;  %s1115_s24 = sphi %s1168_s24, %s1529_s24   ;;  %s1111_s23 = sphi %s1166_s23, %s1528_s23   ;;  %s1107_s22 = sphi %s1164_s22, %s1527_s22   ;;  %s1103_s21 = sphi %s1162_s21, %s1526_s21  }
   0xd   : > { %p46_p0 = scmp.ne.s32.totalorder %s1107_s22, %s1103_s21  ;;  %p1501_p1 = scmp.eq.s32.totalorder %s1183_s25, 0 }
   0xe   : > { %p186_p3 = scmp.eq.s32.totalorder %s734_s26, 1  ;;  %p735_p5 = scmp.ge.s32.totalorder %s1115_s24, 1 }
   0xf   : > { %p1192_p4 = por %p1501_p1, %p46_p0  ;;  %p193_p7 = scmp.lt.s32.totalorder %s1115_s24, 3 }
  0x10   : > { %p1197_p6 = por %p186_p3, %p46_p0  ;;  %s1117_s30 = smov [#allocation7]  }
  0x11   : > { %s1507_s27 = scalar_select %p1192_p4, 1, 0 }
  0x12   : > { %s1508_s28 = scalar_select %p1197_p6, 1, 0 }
  0x13   : > { %p1202_p8 = pnand %p735_p5, %p193_p7  ;;  %s205_s7 = sshll.u32 %s1117_s30, 4  ;;  %s1206_s7 = int_to_ptr.vmem [resolvable:$true] %s205_s7 }
  0x14   : > { %s1118_s9 = smov [#allocation8]   ;;  %s1119_s11 = smov [#allocation10]  }
  0x15   : > { %s1509_s29 = scalar_select %p1202_p8, 1, 0 }
  0x16   : > { %p817_p9 = pneg %p1202_p8  ;;  %s218_s10 = sshll.u32 %s1118_s9, 4  ;;  %s1217_s10 = int_to_ptr.vmem [resolvable:$true] %s218_s10 }
  0x17   : > { %s1219_s12 = sshll.u32 %s1119_s11, 4  ;;  %s1511_s2 = sld [smem:[#allocation18_spill]]  ;;  %s232_s12 = int_to_ptr.vmem [resolvable:$true] %s1219_s12 }
  0x18   : > { %p1213_p11 = pnand %p817_p9, %p1501_p1 }
  0x1a   : > { %p1229_p13 = pneg %p1213_p11 }
  0x1d   : > { %s893_s15 = scalar_lea.hbm %s1511_s2, 256 }
  0x1e   : > { %p894_p12 = scmp.ne.s32.totalorder %s1511_s2, %s893_s15  ;;  %p900_p5 = scmp.lt.u32.totalorder %s893_s15, %s1511_s2 }
  0x20   : > { %p896_p0 = pnand %p1229_p13, %p894_p12 }
  0x22   : > { %p897_p3 = pneg %p896_p0 }
  0x24   : > { %p902_p7 = pnand %p900_p5, %p897_p3 }
  0x26   : > { %905 = shalt.err (!%p902_p7)
}
  0x27   : > { %s906_s26 = scalar_lea.vmem %s1206_s7, 256  ;;  %p914_p2 = scmp.lt.s32.totalorder %s1206_s7, %s1206_s7 }
  0x28   : > { %p907_p9 = scmp.ne.s32.totalorder %s1206_s7, %s906_s26  ;;  %p915_p6 = scmp.lt.s32.totalorder %s906_s26, %s906_s26 }
  0x2a   : > { %p909_p10 = pnand %p907_p9, %p1229_p13  ;;  %p916_p12 = por %p915_p6, %p914_p2 }
  0x2c   : > { %p910_p1 = pneg %p909_p10 }
  0x2e   : > { %p917_p0 = pnand %p916_p12, %p910_p1 }
  0x30   : > { %920 = shalt.err (!%p917_p0)
}
  0x31   : > { %s1120_s30 = smov 64   ;;  %s1121_s9 = smov 4  }
  0x32   : > { %820 = dma.hbm_to_vmem [thread:$0]  (!%p1213_p11), %s1511_s2, 256, %s1206_s7, [#allocation6], %s1120_s30, %s1120_s30, %s1121_s9  }
  0x33   : > { %s1513_s3 = sld [smem:[#allocation19_spill]] }
  0x39   : > { %s921_s16 = scalar_lea.hbm %s1513_s3, 128 }
  0x3a   : > { %p922_p1 = scmp.ne.s32.totalorder %s1513_s3, %s921_s16  ;;  %p928_p10 = scmp.lt.u32.totalorder %s921_s16, %s1513_s3 }
  0x3c   : > { %p924_p2 = pnand %p922_p1, %p1229_p13 }
  0x3e   : > { %p925_p6 = pneg %p924_p2 }
  0x40   : > { %p930_p3 = pnand %p928_p10, %p925_p6 }
  0x42   : > { %933 = shalt.err (!%p930_p3)
}
  0x43   : > { %s934_s7 = scalar_lea.vmem %s1217_s10, 128  ;;  %p942_p12 = scmp.lt.s32.totalorder %s1217_s10, %s1217_s10 }
  0x44   : > { %p935_p5 = scmp.ne.s32.totalorder %s1217_s10, %s934_s7  ;;  %p943_p0 = scmp.lt.s32.totalorder %s934_s7, %s934_s7 }
  0x46   : > { %p937_p7 = pnand %p935_p5, %p1229_p13  ;;  %p944_p1 = por %p943_p0, %p942_p12 }
  0x48   : > { %p938_p9 = pneg %p937_p7 }
  0x4a   : > { %p945_p2 = pnand %p944_p1, %p938_p9 }
  0x4c   : > { %948 = shalt.err (!%p945_p2)
}
  0x4d   : > { %823 = dma.hbm_to_vmem [thread:$0]  (!%p1213_p11), %s1513_s3, 128, %s1217_s10, [#allocation9], %s1120_s30, %s1120_s30, %s1121_s9  }
  0x4e   : > { %s949_s16 = scalar_lea.hbm %s1498_s4, 128 }
  0x4f   : > { %p950_p6 = scmp.ne.s32.totalorder %s1498_s4, %s949_s16  ;;  %p956_p5 = scmp.lt.u32.totalorder %s949_s16, %s1498_s4 }
  0x51   : > { %p952_p10 = pnand %p950_p6, %p1229_p13 }
  0x53   : > { %p953_p3 = pneg %p952_p10 }
  0x55   : > { %p958_p7 = pnand %p956_p5, %p953_p3 }
  0x57   : > { %961 = shalt.err (!%p958_p7)
}
  0x58   : > { %s962_s7 = scalar_lea.vmem %s232_s12, 128  ;;  %p970_p1 = scmp.lt.s32.totalorder %s232_s12, %s232_s12 }
  0x59   : > { %p963_p9 = scmp.ne.s32.totalorder %s232_s12, %s962_s7  ;;  %p971_p2 = scmp.lt.s32.totalorder %s962_s7, %s962_s7 }
  0x5b   : > { %p965_p12 = pnand %p963_p9, %p1229_p13  ;;  %p972_p4 = por %p971_p2, %p970_p1 }
  0x5d   : > { %p966_p0 = pneg %p965_p12 }
  0x5f   : > { %p973_p8 = pnand %p972_p4, %p966_p0 }
  0x61   : > { %976 = shalt.err (!%p973_p8)
}
  0x62   : > { %826 = dma.hbm_to_vmem [thread:$0]  (!%p1213_p11), %s1498_s4, 128, %s232_s12, [#allocation9], %s1120_s30, %s1120_s30, %s1121_s9  }
  0x63   : > { %s1302_s8 = sadd.s32 1, %s1115_s24   ;;  %s33_s13 = sadd.s32 1, %s1111_s23 }
  0x64   : > { %s30_s18 = ssub.s32 %s1115_s24, %s1302_s8  ;;  %p40_p8 = scmp.ne.s32.totalorder %s1111_s23, %s1107_s22 }
  0x65   : > { %p31_p4 = scmp.eq.s32.totalorder %s30_s18, 0  ;;  %p41_p13 = scmp.eq.s32.totalorder %s1115_s24, 0 }
  0x66   : > { %p841_p6 = scmp.lt.s32.totalorder %s1115_s24, 2  ;;  %p1514_p3 = scmp.eq.s32.totalorder %s1183_s25, 1 }
  0x67   : > { %s1312_s14 = scalar_select %p31_p4, %s1111_s23, %s33_s13  }
  0x68   : > { %p42_p10 = por %p41_p13, %p40_p8  ;;  %p1316_p5 = por %p1514_p3, %p40_p8 }
  0x69   : > { %s248_s16 = sand.u32 1, %s1111_s23   ;;  %s765_s17 = sshll.u32 %s1115_s24, 9 }
  0x6a   : > { %s1322_s12 = sshll.u32 %s248_s16, 5  ;;  %s1516_s0 = sld [smem:[#allocation17_spill]] }
  0x6b   : > { %s252_s20 = scalar_lea.vmem [#allocation2], %s1322_s12  ;;  %p1332_p11 = pnand %p841_p6, %p42_p10 }
  0x6c   : > { %s259_s26 = sshll.u32 %s252_s20, 4  ;;  %s1338_s10 = scalar_lea.sflag [#allocation3], %s248_s16  ;;  %s1336_s26 = int_to_ptr.vmem [resolvable:$true] %s259_s26 }
  0x6d   : > { %p979_p9 = pneg %p1332_p11 }
  0x70   : > { %s1329_s19 = scalar_lea.hbm %s1516_s0, %s765_s17  ;;  %s982_s30 = scalar_lea.hbm %s1516_s0, 1024 }
  0x71   : > { %s977_s11 = scalar_lea.hbm %s1329_s19, 512  ;;  %p983_p1 = scmp.lt.u32.totalorder %s1329_s19, %s1516_s0 }
  0x72   : > { %p978_p7 = scmp.ne.s32.totalorder %s1329_s19, %s977_s11  ;;  %p984_p2 = scmp.lt.u32.totalorder %s982_s30, %s977_s11 }
  0x73   : > { %p986_p8 = scmp.lt.u32.totalorder %s977_s11, %s1329_s19 }
  0x74   : > { %p980_p12 = pnand %p979_p9, %p978_p7  ;;  %p985_p4 = por %p984_p2, %p983_p1 }
  0x76   : > { %p981_p0 = pneg %p980_p12  ;;  %p987_p13 = por %p986_p8, %p985_p4 }
  0x78   : > { %p988_p6 = pnand %p987_p13, %p981_p0 }
  0x7a   : > { %991 = shalt.err (!%p988_p6)
}
  0x7b   : > { %s992_s16 = scalar_lea.vmem %s1336_s26, 512  ;;  %s1122_s18 = smov [#allocation2]  }
  0x7c   : > { %p993_p10 = scmp.ne.s32.totalorder %s1336_s26, %s992_s16  ;;  %s997_s13 = sshll.u32 %s1122_s18, 4  ;;  %s998_s13 = int_to_ptr.vmem [resolvable:$false] %s997_s13 }
  0x7d   : > { %s999_s9 = scalar_lea.vmem %s998_s13, 1024  ;;  %p1000_p12 = scmp.lt.s32.totalorder %s1336_s26, %s998_s13 }
  0x7e   : > { %p995_p3 = pnand %p993_p10, %p979_p9  ;;  %p1001_p1 = scmp.lt.s32.totalorder %s999_s9, %s992_s16 }
  0x80   : > { %p996_p7 = pneg %p995_p3  ;;  %p1002_p2 = por %p1001_p1, %p1000_p12 }
  0x82   : > { %p1003_p4 = pnand %p1002_p2, %p996_p7 }
  0x84   : > { %1006 = shalt.err (!%p1003_p4)
}
  0x85   : > { %s1123_s11 = smov 128   ;;  %s1124_s30 = smov 8  }
  0x86   : > { %830 = dma.hbm_to_vmem [thread:$0]  (!%p1332_p11), %s1329_s19, 512, %s1336_s26, %s1338_s10, %s1123_s11, %s1123_s11, %s1124_s30  }
  0x87   : > { %s1374_s18 = scalar_lea.hbm %s1495_s1, %s765_s17  ;;  %s273_s13 = scalar_lea.vmem [#allocation5], %s1322_s12 }
  0x88   : > { %s280_s9 = sshll.u32 %s273_s13, 4  ;;  %s269_s0 = sand.u32 1, %s1115_s24   ;;  %s1378_s9 = int_to_ptr.vmem [resolvable:$true] %s280_s9 }
  0x89   : > { %s1380_s2 = scalar_lea.sflag [#allocation6], %s269_s0  ;;  %s1007_s3 = scalar_lea.hbm %s1374_s18, 512 }
  0x8a   : > { %p1008_p0 = scmp.ne.s32.totalorder %s1374_s18, %s1007_s3  ;;  %s1012_s26 = scalar_lea.hbm %s1495_s1, 1024 }
  0x8b   : > { %p1013_p6 = scmp.lt.u32.totalorder %s1374_s18, %s1495_s1  ;;  %p1014_p10 = scmp.lt.u32.totalorder %s1012_s26, %s1007_s3 }
  0x8c   : > { %p1010_p8 = pnand %p1008_p0, %p979_p9  ;;  %p1016_p7 = scmp.lt.u32.totalorder %s1007_s3, %s1374_s18 }
  0x8d   : > { %p1015_p3 = por %p1014_p10, %p1013_p6 }
  0x8e   : > { %p1011_p13 = pneg %p1010_p8 }
  0x8f   : > { %p1017_p12 = por %p1016_p7, %p1015_p3 }
  0x91   : > { %p1018_p1 = pnand %p1017_p12, %p1011_p13 }
  0x93   : > { %1021 = shalt.err (!%p1018_p1)
}
  0x94   : > { %s1022_s0 = scalar_lea.vmem %s1378_s9, 512  ;;  %s1125_s12 = smov [#allocation5]  }
  0x95   : > { %p1023_p2 = scmp.ne.s32.totalorder %s1378_s9, %s1022_s0  ;;  %s1027_s16 = sshll.u32 %s1125_s12, 4  ;;  %s1028_s16 = int_to_ptr.vmem [resolvable:$false] %s1027_s16 }
  0x96   : > { %s1029_s13 = scalar_lea.vmem %s1028_s16, 1024  ;;  %p1030_p8 = scmp.lt.s32.totalorder %s1378_s9, %s1028_s16 }
  0x97   : > { %p1025_p4 = pnand %p1023_p2, %p979_p9  ;;  %p1031_p6 = scmp.lt.s32.totalorder %s1029_s13, %s1022_s0 }
  0x99   : > { %p1026_p0 = pneg %p1025_p4  ;;  %p1032_p10 = por %p1031_p6, %p1030_p8 }
  0x9b   : > { %p1033_p3 = pnand %p1032_p10, %p1026_p0 }
  0x9d   : > { %1036 = shalt.err (!%p1033_p3)
}
  0x9e   : > { %833 = dma.hbm_to_vmem [thread:$0]  (!%p1332_p11), %s1374_s18, 512, %s1378_s9, %s1380_s2, %s1123_s11, %s1123_s11, %s1124_s30  }
  0x9f   : > { %p1518_p9 = scmp.ne.s32.totalorder %s1509_s29, 0 }
  0xa0   : > { %s1412_s3 = sand.u32 (!%p1518_p9), 1, %s1107_s22   ;;  %p1519_p13 = scmp.ne.s32.totalorder (!%p1518_p9), %s1507_s27, 0 }
  0xa1   : > { %292 = sbr.rel (%p1518_p9) target bundleno = 879 (0x36f), region = 44  ;;  %s747_s19 = sshll.u32 (!%p1518_p9), %s1412_s3, 5 }
  0xa2   : > { %s295_s17 = scalar_lea.sflag (!%p1518_p9), [#allocation3], %s1412_s3  ;;  %s298_s26 = scalar_lea.vmem (!%p1518_p9), [#allocation2], %s747_s19 }
  0xa8   : > { %1082 = dma.done.wait (%p1519_p13), %s295_s17, 512  }
  0xa9   : > { %1084 = vsyncadd (%p1519_p13), %s295_s17, 4294966784  ;;  %s303_s2 = sand.u32 1, %s1183_s25   ;;  %s307_s29 = scalar_lea.vmem [#allocation5], %s747_s19 }
  0xaa   : > { %s304_s7 = scalar_lea.sflag [#allocation6], %s303_s2 }
  0xab   : > { %1086 = dma.done.wait (%p1519_p13), %s304_s7, 512  }
  0xac   : > { %1088 = vsyncadd (%p1519_p13), %s304_s7, 4294966784  ;;  %p1520_p11 = scmp.eq.s32.totalorder %s1183_s25, 0 }
  0xae   : > { %1090 = dma.done.wait (%p1520_p11), [#allocation6], 256   ;;  %p1521_p7 = pmov %p1520_p11 }
  0xb0   : > { %1092 = vsyncadd (%p1521_p7), [#allocation6], 4294967040  ;;  %p1522_p12 = pmov %p1521_p7 }
  0xb1   : > { %p1523_p1 = pmov %p1521_p7 }
  0xb2   : > { %1094 = dma.done.wait (%p1522_p12), [#allocation9], 256  }
  0xb3   : > { %1096 = vsyncadd (%p1523_p1), [#allocation9], 4294967040  ;;  %v361_v0 = vld [vmem:[%s298_s26] sm:$0xff]  ;;  %v362_v1 = vld [vmem:[%s298_s26 + $0x8] sm:$0xff]  ;;  %vm385_vm0 = vcmask 261120   ;;  %vm449_vm1 = vcmask 130048  }
  0xb4   : > { %v365_v2 = vld [vmem:[%s307_s29] sm:$0xff]  ;;  %v366_v3 = vld [vmem:[%s307_s29 + $0x8] sm:$0xff]  ;;  %v363_v5 = vld [vmem:[%s298_s26 + $0x10] sm:$0xff]  ;;  %s351_s9 = scalar_lea.vmem [#allocation11], %s1412_s3  ;;  %s762_s20 = sshll.u32 %s1183_s25, 4 }
  0xb5   : > { %v369_v4 = vsub.f32 %v361_v0, %v365_v2  ;;  %v364_v6 = vld [vmem:[%s298_s26 + $0x18] sm:$0xff]  ;;  %v370_v7 = vsub.f32 %v362_v1, %v366_v3  ;;  %v367_v8 = vld [vmem:[%s307_s29 + $0x10] sm:$0xff]  ;;  %v885_v12 = vld [vmem:[#allocation7] sm:$0xff]   ;;  %s617_s10 = sshll.u32 %s351_s9, 4  ;;  %s1452_s13 = scalar_lea.hbm %s1500_s6, %s762_s20  ;;  %s1447_s10 = int_to_ptr.vmem [resolvable:$true] %s617_s10 }
  0xb6   : > { %v368_v9 = vld [vmem:[%s307_s29 + $0x18] sm:$0xff]  ;;  %v371_v10 = vsub.f32 %v363_v5, %v367_v8  ;;  %781 = vmatprep.mubr.msk.bf16.mxu0 %vm385_vm0, %v885_v12  ;;  %v886_v15 = vld [vmem:[#allocation7 + $0x8] sm:$0xff]   ;;  %v887_v16 = vld [vmem:[#allocation8] sm:$0xff]   ;;  %s605_s19 = scalar_lea.sflag [#allocation4], %s1412_s3  ;;  %s1037_s17 = scalar_lea.vmem %s1447_s10, 16 }
  0xb7   : > { %v372_v11 = vsub.f32 %v364_v6, %v368_v9  ;;  %v373_v13 = vpack.c.bf16 %v370_v7, %v369_v4  ;;  %785 = vmatprep.subr.bf16.mxu1 %v887_v16  ;;  %v888_v17 = vld [vmem:[#allocation10] sm:$0xff]   ;;  %v586_v46 = vld [vmem:[%s1499_s5] sm:$0xff]  ;;  %v587_v51 = vld [vmem:[%s1499_s5 + $0x8] sm:$0xff]  ;;  %p1038_p2 = scmp.ne.s32.totalorder %s1447_s10, %s1037_s17  ;;  %s1126_s25 = smov [#allocation11]  }
  0xb8   : > { %786 = vmatpush3.bf16.msra.mxu1 %v887_v16  ;;  %s1041_s26 = sshll.u32 %s1126_s25, 4  ;;  %s1042_s26 = int_to_ptr.vmem [resolvable:$false] %s1041_s26 }
  0xb9   : > { %v374_v14 = vpack.c.bf16 %v372_v11, %v371_v10  ;;  %777 = vmatprep.subr.bf16.mxu0 %v373_v13  ;;  %791 = vmatprep.subr.bf16.mxu1 %v888_v17  ;;  %p1039_p4 = pnand %p1038_p2, %p1316_p5  ;;  %s1043_s2 = scalar_lea.vmem %s1042_s26, 32 }
  0xba   : > { %778 = vmatpush3.bf16.msra.mxu0 %v373_v13  ;;  %p1044_p8 = scmp.lt.s32.totalorder %s1447_s10, %s1042_s26  ;;  %p1045_p6 = scmp.lt.s32.totalorder %s1043_s2, %s1037_s17 }
  0xbb   : > { %779 = vmatprep.subr.bf16.mxu0 %v374_v14  ;;  %p1040_p0 = pneg %p1039_p4 }
  0xbc   : > { %p1046_p10 = por %p1045_p6, %p1044_p8 }
  0xbe   : > { %780 = vmatpush3.bf16.msra.mxu0 %v374_v14  ;;  %p1047_p3 = pnand %p1046_p10, %p1040_p0 }
  0xc1   : > { %782 = vmatmul.mubr.msk.bf16.vlgmr.msra.gmra.mrb[0].mxu0 %vm385_vm0, %v886_v15 }
 0x194   : > { %v783_v18 = vpop.f32.mrb[0].mxu0 }
 0x195   : > { %v426_v19 = vpop.f32.mrb[1].mxu0 }
 0x196   : > { %v784_v20 = vpop.f32.mrb[2].mxu0 }
 0x197   : > { %v442_v21 = vpack.c.bf16 %v784_v20, %v783_v18  ;;  %v429_v22 = vpop.f32.mrb[3].mxu0 }
 0x198   : > { %v441_v23 = vpack.c.bf16 %v429_v22, %v426_v19 }
 0x19a   : > { %787 = vmatprep.mubr.msk.bf16.mxu1 %vm449_vm1, %v441_v23 }
 0x19b   : > { %788 = vmatmul.mubr.msk.bf16.vlgmr.msra.gmra.mrb[0].mxu1 %vm449_vm1, %v442_v21 }
 0x19c   : > { %792 = vmatpush3.bf16.msra.mxu1 %v888_v17  ;;  %793 = vmatprep.mubr.msk.bf16.mxu1 %vm449_vm1, %v441_v23 }
 0x1a3   : > { %794 = vmatmul.mubr.msk.bf16.vlgmr.msra.gmra.mrb[4].mxu1 %vm449_vm1, %v442_v21 }
 0x26e   : > { %v789_v24 = vpop.f32.mrb[0].mxu1 }
 0x26f   : > { %v490_v25 = vpop.f32.mrb[1].mxu1 }
 0x270   : > { %v790_v26 = vpop.f32.mrb[2].mxu1 }
 0x271   : > { %v493_v27 = vpop.f32.mrb[3].mxu1 }
 0x276   : > { %v795_v28 = vpop.f32.mrb[4].mxu1 }
 0x277   : > { %v560_v29 = vsub.f32 %v490_v25, %v795_v28  ;;  %v545_v30 = vpop.f32.mrb[5].mxu1 }
 0x278   : > { %v562_v31 = vadd.f32 %v789_v24, %v545_v30  ;;  %v796_v32 = vpop.f32.mrb[6].mxu1 }
 0x279   : > { %v564_v33 = vmul.f32 %v560_v29, %v560_v29  ;;  %v561_v34 = vsub.f32 %v493_v27, %v796_v32  ;;  %v548_v35 = vpop.f32.mrb[7].mxu1 }
 0x27a   : > { %v566_v36 = vmul.f32 %v562_v31, %v562_v31  ;;  %v563_v37 = vadd.f32 %v790_v26, %v548_v35 }
 0x27b   : > { %v565_v38 = vmul.f32 %v561_v34, %v561_v34 }
 0x27c   : > { %v568_v39 = vadd.f32 %v566_v36, %v564_v33  ;;  %v567_v40 = vmul.f32 %v563_v37, %v563_v37 }
 0x27e   : > { %889 = vrsqrt.f32 %v568_v39  ;;  %v569_v41 = vadd.f32 %v567_v40, %v565_v38  ;;  %vm572_vm2 = vcmp.eq.f32.partialorder %v568_v39, inf  ;;  %v575_v45 = vand.u32 2147483648, %v568_v39 }
 0x27f   : > { %vm574_vm3 = vcmp.eq.f32.partialorder %v568_v39, 0.0 }
 0x280   : > { %891 = vrsqrt.f32 %v569_v41  ;;  %vm579_vm4 = vcmp.eq.f32.partialorder %v569_v41, inf  ;;  %v582_v50 = vand.u32 2147483648, %v569_v41  ;;  %vm581_vm5 = vcmp.eq.f32.partialorder %v569_v41, 0.0 }
 0x288   : > { %v890_v42 = vpop.eup %889 }
 0x289   : > { %v571_v43 = vmul.f32 %v890_v42, %v568_v39 }
 0x28a   : > { %v892_v44 = vpop.eup %891 }
 0x28b   : > { %v573_v47 = vsel %vm572_vm2, %v568_v39, %v571_v43  ;;  %v578_v48 = vmul.f32 %v892_v44, %v569_v41 }
 0x28c   : > { %v576_v49 = vsel %vm574_vm3, %v575_v45, %v573_v47 }
 0x28d   : > { %v580_v52 = vsel %vm579_vm4, %v569_v41, %v578_v48  ;;  %v588_v53 = vmul.f32 %v586_v46, %v576_v49 }
 0x28e   : > { %v583_v54 = vsel %vm581_vm5, %v582_v50, %v580_v52 }
 0x28f   : > { %v589_v55 = vmul.f32 %v587_v51, %v583_v54  ;;  %v590_v56 = vsel %vm449_vm1, %v588_v53, 0.0 }
 0x291   : > { %v591_v57 = vsel %vm449_vm1, %v589_v55, 0.0 }
 0x292   : > { %v592_v58 = vadd.f32 %v591_v57, %v590_v56 }
 0x294   : > { %593 = vadd.xlane.f32.xlu0 %v592_v58 }
 0x321   : > { %v594_v59 = vpop.xlane.xlu0 %593 }
 0x322   : > { %v595_v60 = vrot.slane %v594_v59, 4 }
 0x324   : > { %v596_v61 = vadd.f32 %v595_v60, %v594_v59 }
 0x326   : > { %v597_v62 = vrot.slane %v596_v61, 2 }
 0x328   : > { %v598_v63 = vadd.f32 %v597_v62, %v596_v61 }
 0x32a   : > { %v599_v0 = vrot.slane %v598_v63, 1 }
 0x32c   : > { %v600_v1 = vadd.f32 %v599_v0, %v598_v63 }
 0x32e   : > { %797 = vpush %v600_v1 }
 0x35f   : > { %s798_s0 = spop %797 }
 0x360   : > { %v602_v2 = vstv %s798_s0 }
 0x361   : > { %603 = vst [vmem:[%s351_s9] sm:$0x1] %v602_v2 }
 0x362   : > { %1050 = shalt.err (!%p1047_p3)
}
 0x363   : > { %s1051_s3 = scalar_lea.hbm %s1452_s13, 16  ;;  %s1055_s27 = scalar_lea.hbm %s1500_s6, 32 }
 0x364   : > { %p1052_p9 = scmp.ne.s32.totalorder %s1452_s13, %s1051_s3  ;;  %p1056_p7 = scmp.lt.u32.totalorder %s1452_s13, %s1500_s6 }
 0x365   : > { %p1057_p12 = scmp.lt.u32.totalorder %s1055_s27, %s1051_s3  ;;  %p1059_p2 = scmp.lt.u32.totalorder %s1051_s3, %s1452_s13 }
 0x366   : > { %p1053_p13 = pnand %p1052_p9, %p1316_p5 }
 0x367   : > { %p1058_p1 = por %p1057_p12, %p1056_p7 }
 0x368   : > { %p1054_p11 = pneg %p1053_p13 }
 0x369   : > { %p1060_p4 = por %p1059_p2, %p1058_p1 }
 0x36b   : > { %p1061_p0 = pnand %p1060_p4, %p1054_p11 }
 0x36d   : > { %1064 = shalt.err (!%p1061_p0)
}
 0x36e   : > { %815 = dma.vmem_to_hbm [thread:$0]  (%p1316_p5), %s1447_s10, 16, %s1452_s13, %s605_s19  }
 0x36f PF: > { %s629_s18 = sand.u32 1, %s1103_s21   ;;  %p1524_p8 = scmp.ne.s32.totalorder %s1508_s28, 0 }
 0x370   : > { %p1525_p6 = scmp.ge.s32.totalorder %s1115_s24, 2  ;;  %s630_s9 = scalar_lea.sflag [#allocation4], %s629_s18 }
 0x372   : > { %p835_p10 = pnand %p1525_p6, %p1524_p8 }
 0x374   : > { %1098 = dma.done.wait (!%p835_p10), %s630_s9, 16  }
 0x375   : > { %1100 = vsyncadd (!%p835_p10), %s630_s9, 4294967280  ;;  %p23_p3 = scmp.ge.s32.totalorder %s1302_s8, 4   ;;  %s1526_s21 = smov %s1107_s22 }
 0x376   : > { %s1527_s22 = smov %s1111_s23  ;;  %s1528_s23 = smov %s1312_s14 }
 0x377   : > { %s1529_s24 = smov %s1302_s8  ;;  %25 = sbr.rel (!%p23_p3) target bundleno = 12 (0xc), region = 114 }
 0x37e   :  { %634 = vsyncpa [#allocation3], 1 }
 0x37f   :  { %636 = vsyncpa [#allocation3 + $0x1], 1 }
 0x380   :  { %637 = vsyncpa [#allocation6], 1 }
 0x381   :  { %639 = vsyncpa [#allocation6 + $0x1], 1 }
 0x382   :  { %640 = vsyncpa [#allocation9], 1 }
 0x383   :  { %641 = vsyncpa [#allocation4], 1 }
 0x384   :  { %643 = vsyncpa [#allocation4 + $0x1], 1 }

</bundles_post_ra>
